<compile_context>
chip_gen: v7x
topology: tpu7x:2x2x1
jax: 0.10.0
libtpu: 0.0.40
codegen_flags: <defaults>
</compile_context>

<pallas_src>
import functools

import jax
import jax.numpy as jnp
from jax import lax
from jax.experimental import pallas as pl
from jax.experimental.pallas import tpu as pltpu


def _bigram_kernel(ids_ref, tgt_ref, table_ref, logits_ref, loss_ref, *, n_rows):
    """ids_ref: SMEM (N,) int32 (scalar prefetch); tgt_ref: VMEM (N,1) int32;
    table_ref: VMEM (V,V) f32; logits_ref: VMEM (N,V) f32; loss_ref: VMEM (1,1) f32."""
    # --- Embedding gather: exact row copy per token (dynamic sublane slice of the
    #     VMEM-resident table). Static unrolled loop; N is small and known.
    for i in range(n_rows):
        tok = ids_ref[i]                                   # scalar int32 from SMEM
        logits_ref[pl.ds(i, 1), :] = table_ref[pl.ds(tok, 1), :]

    # --- Cross-entropy (mean over the N rows), vectorized on the gathered logits.
    lg = logits_ref[...]                                   # (N, V) f32
    m = jnp.max(lg, axis=-1, keepdims=True)                # (N, 1)
    lse = m + jnp.log(jnp.sum(jnp.exp(lg - m), axis=-1, keepdims=True))   # (N, 1)
    lane = lax.broadcasted_iota(jnp.int32, lg.shape, 1)    # (N, V)
    picked = jnp.sum(jnp.where(lane == tgt_ref[...], lg, 0.0),
                     axis=-1, keepdims=True)               # (N, 1) = logit at target
    loss_ref[...] = jnp.sum(lse - picked, axis=0, keepdims=True) * (1.0 / n_rows)


def bigram_forward(inputs, table, targets=None):
    """inputs: (B, T) int32 token ids; table: (V, V) f32; targets: (B, T) int32 or None.

    Mirrors the PyTorch forward: returns (logits (B,T,V), None) if targets is None,
    else (logits (B*T, V), loss scalar)."""
    B, T = inputs.shape
    V = table.shape[0]
    N = B * T

    ids_flat = inputs.reshape(N).astype(jnp.int32)
    if targets is None:
        tgt_col = jnp.zeros((N, 1), dtype=jnp.int32)       # loss output ignored
    else:
        tgt_col = targets.reshape(N, 1).astype(jnp.int32)

    kernel = functools.partial(_bigram_kernel, n_rows=N)

    logits2d, loss = pl.pallas_call(
        kernel,
        out_shape=(
            jax.ShapeDtypeStruct((N, V), table.dtype),     # logits, lane-dense (V=128)
            jax.ShapeDtypeStruct((1, 1), jnp.float32),     # mean cross-entropy loss
        ),
        grid_spec=pltpu.PrefetchScalarGridSpec(
            num_scalar_prefetch=1,                         # token ids -> SMEM
            grid=(1,),                                     # single step, B folded into rows
            in_specs=[
                pl.BlockSpec((N, 1), lambda i, ids: (0, 0)),   # targets column (VMEM)
                pl.BlockSpec((V, V), lambda i, ids: (0, 0)),   # whole embedding table (VMEM)
            ],
            out_specs=(
                pl.BlockSpec((N, V), lambda i, ids: (0, 0)),
                pl.BlockSpec((1, 1), lambda i, ids: (0, 0)),
            ),
        ),
        compiler_params=pltpu.CompilerParams(
            dimension_semantics=("arbitrary",)),
    )(ids_flat, tgt_col, table)

    if targets is None:
        return logits2d.reshape(B, T, V), None
    return logits2d, loss[0, 0]


def bigram_reference(inputs, table, targets=None):
    """Pure-JAX reference matching the PyTorch BigramLanguageModel.forward."""
    logits = table[inputs]                                 # (B, T, V)
    if targets is None:
        return logits, None
    B, T, V = logits.shape
    lg = logits.reshape(B * T, V)
    tg = targets.reshape(B * T)
    logp = jax.nn.log_softmax(lg, axis=-1)
    loss = -jnp.mean(logp[jnp.arange(B * T), tg])
    return lg, loss


# TODO(synk): generate() uses torch.multinomial inside a host-side autoregressive
# loop; it is sampling control flow (not part of forward) and is not implemented
# as a Pallas kernel.


if __name__ == "__main__":
    # Small shapes consistent with the module: batch=2, seq=8, vocab=128
    # (128 chosen so the logits block is lane-dense / fully aligned).
    B, T = 2, 8
    vocab_size = 128

    key = jax.random.PRNGKey(0)
    k_tab, k_in, k_tg = jax.random.split(key, 3)

    table = jax.random.normal(k_tab, (vocab_size, vocab_size), dtype=jnp.float32)
    inputs = jax.random.randint(k_in, (B, T), 0, vocab_size, dtype=jnp.int32)
    targets = jax.random.randint(k_tg, (B, T), 0, vocab_size, dtype=jnp.int32)

    # Path with targets (logits reshaped to (B*T, V) + loss), as in the PyTorch code.
    logits, loss = bigram_forward(inputs, table, targets)
    logits, loss = jax.block_until_ready((logits, loss))

    ref_logits, ref_loss = bigram_reference(inputs, table, targets)
    assert logits.shape == (B * T, vocab_size)
    assert jnp.allclose(logits, ref_logits, atol=1e-5, rtol=1e-5), "logits mismatch vs reference"
    assert jnp.allclose(loss, ref_loss, atol=1e-4, rtol=1e-4), "loss mismatch vs reference"

    # Path without targets (logits stay (B, T, V), loss is None).
    logits_only, no_loss = bigram_forward(inputs, table, None)
    logits_only = jax.block_until_ready(logits_only)
    assert no_loss is None
    assert logits_only.shape == (B, T, vocab_size)
    assert jnp.allclose(logits_only.reshape(B * T, vocab_size), ref_logits,
                        atol=1e-5, rtol=1e-5), "logits (no-target path) mismatch vs reference"

    print("KERNEL_OK")
</pallas_src>

<mosaic_0001>
module attributes {stable_mosaic.version = 11 : i64} {
  func.func @_bigram_kernel(%arg0: i32, %arg1: memref<16xi32, #tpu.memory_space<smem>>, %arg2: memref<16x1xi32, #tpu.memory_space<vmem>>, %arg3: memref<128x128xf32, #tpu.memory_space<vmem>>, %arg4: memref<16x128xf32, #tpu.memory_space<vmem>>, %arg5: memref<1x1xf32, #tpu.memory_space<vmem>>) attributes {dimension_semantics = [#tpu.dimension_semantics<arbitrary>], iteration_bounds = array<i64: 1>, scalar_prefetch = 1 : i64, scratch_operands = 0 : i64, tpu.core_type = #tpu.core_type<tc>, window_params = [{pipeline_mode = #tpu.pipeline_mode<synchronous>, transform_indices = @transform_0, window_bounds = array<i64: 16, 1>}, {pipeline_mode = #tpu.pipeline_mode<synchronous>, transform_indices = @transform_1, window_bounds = array<i64: 128, 128>}, {pipeline_mode = #tpu.pipeline_mode<synchronous>, transform_indices = @transform_2, window_bounds = array<i64: 16, 128>}, {pipeline_mode = #tpu.pipeline_mode<synchronous>, transform_indices = @transform_3, window_bounds = array<i64: 1, 1>}]} {
    %c0 = arith.constant 0 : index
    %0 = memref.load %arg1[%c0] : memref<16xi32, #tpu.memory_space<smem>>
    %1 = arith.index_cast %0 : i32 to index
    %c0_0 = arith.constant 0 : index
    %2 = vector.load %arg3[%1, %c0_0] : memref<128x128xf32, #tpu.memory_space<vmem>>, vector<1x128xf32>
    %c0_1 = arith.constant 0 : index
    %c0_2 = arith.constant 0 : index
    %3 = vector.load %arg4[%c0_1, %c0_2] : memref<16x128xf32, #tpu.memory_space<vmem>>, vector<1x128xf32>
    tpu.vector_store %arg4[%c0_1, %c0_2], %2 {strides = array<i32>} : memref<16x128xf32, #tpu.memory_space<vmem>>, vector<1x128xf32>,
    %c1 = arith.constant 1 : index
    %4 = memref.load %arg1[%c1] : memref<16xi32, #tpu.memory_space<smem>>
    %5 = arith.index_cast %4 : i32 to index
    %c0_3 = arith.constant 0 : index
    %6 = vector.load %arg3[%5, %c0_3] : memref<128x128xf32, #tpu.memory_space<vmem>>, vector<1x128xf32>
    %c1_4 = arith.constant 1 : index
    %c0_5 = arith.constant 0 : index
    %7 = vector.load %arg4[%c1_4, %c0_5] : memref<16x128xf32, #tpu.memory_space<vmem>>, vector<1x128xf32>
    tpu.vector_store %arg4[%c1_4, %c0_5], %6 {strides = array<i32>} : memref<16x128xf32, #tpu.memory_space<vmem>>, vector<1x128xf32>,
    %c2 = arith.constant 2 : index
    %8 = memref.load %arg1[%c2] : memref<16xi32, #tpu.memory_space<smem>>
    %9 = arith.index_cast %8 : i32 to index
    %c0_6 = arith.constant 0 : index
    %10 = vector.load %arg3[%9, %c0_6] : memref<128x128xf32, #tpu.memory_space<vmem>>, vector<1x128xf32>
    %c2_7 = arith.constant 2 : index
    %c0_8 = arith.constant 0 : index
    %11 = vector.load %arg4[%c2_7, %c0_8] : memref<16x128xf32, #tpu.memory_space<vmem>>, vector<1x128xf32>
    tpu.vector_store %arg4[%c2_7, %c0_8], %10 {strides = array<i32>} : memref<16x128xf32, #tpu.memory_space<vmem>>, vector<1x128xf32>,
    %c3 = arith.constant 3 : index
    %12 = memref.load %arg1[%c3] : memref<16xi32, #tpu.memory_space<smem>>
    %13 = arith.index_cast %12 : i32 to index
    %c0_9 = arith.constant 0 : index
    %14 = vector.load %arg3[%13, %c0_9] : memref<128x128xf32, #tpu.memory_space<vmem>>, vector<1x128xf32>
    %c3_10 = arith.constant 3 : index
    %c0_11 = arith.constant 0 : index
    %15 = vector.load %arg4[%c3_10, %c0_11] : memref<16x128xf32, #tpu.memory_space<vmem>>, vector<1x128xf32>
    tpu.vector_store %arg4[%c3_10, %c0_11], %14 {strides = array<i32>} : memref<16x128xf32, #tpu.memory_space<vmem>>, vector<1x128xf32>,
    %c4 = arith.constant 4 : index
    %16 = memref.load %arg1[%c4] : memref<16xi32, #tpu.memory_space<smem>>
    %17 = arith.index_cast %16 : i32 to index
    %c0_12 = arith.constant 0 : index
    %18 = vector.load %arg3[%17, %c0_12] : memref<128x128xf32, #tpu.memory_space<vmem>>, vector<1x128xf32>
    %c4_13 = arith.constant 4 : index
    %c0_14 = arith.constant 0 : index
    %19 = vector.load %arg4[%c4_13, %c0_14] : memref<16x128xf32, #tpu.memory_space<vmem>>, vector<1x128xf32>
    tpu.vector_store %arg4[%c4_13, %c0_14], %18 {strides = array<i32>} : memref<16x128xf32, #tpu.memory_space<vmem>>, vector<1x128xf32>,
    %c5 = arith.constant 5 : index
    %20 = memref.load %arg1[%c5] : memref<16xi32, #tpu.memory_space<smem>>
    %21 = arith.index_cast %20 : i32 to index
    %c0_15 = arith.constant 0 : index
    %22 = vector.load %arg3[%21, %c0_15] : memref<128x128xf32, #tpu.memory_space<vmem>>, vector<1x128xf32>
    %c5_16 = arith.constant 5 : index
    %c0_17 = arith.constant 0 : index
    %23 = vector.load %arg4[%c5_16, %c0_17] : memref<16x128xf32, #tpu.memory_space<vmem>>, vector<1x128xf32>
    tpu.vector_store %arg4[%c5_16, %c0_17], %22 {strides = array<i32>} : memref<16x128xf32, #tpu.memory_space<vmem>>, vector<1x128xf32>,
    %c6 = arith.constant 6 : index
    %24 = memref.load %arg1[%c6] : memref<16xi32, #tpu.memory_space<smem>>
    %25 = arith.index_cast %24 : i32 to index
    %c0_18 = arith.constant 0 : index
    %26 = vector.load %arg3[%25, %c0_18] : memref<128x128xf32, #tpu.memory_space<vmem>>, vector<1x128xf32>
    %c6_19 = arith.constant 6 : index
    %c0_20 = arith.constant 0 : index
    %27 = vector.load %arg4[%c6_19, %c0_20] : memref<16x128xf32, #tpu.memory_space<vmem>>, vector<1x128xf32>
    tpu.vector_store %arg4[%c6_19, %c0_20], %26 {strides = array<i32>} : memref<16x128xf32, #tpu.memory_space<vmem>>, vector<1x128xf32>,
    %c7 = arith.constant 7 : index
    %28 = memref.load %arg1[%c7] : memref<16xi32, #tpu.memory_space<smem>>
    %29 = arith.index_cast %28 : i32 to index
    %c0_21 = arith.constant 0 : index
    %30 = vector.load %arg3[%29, %c0_21] : memref<128x128xf32, #tpu.memory_space<vmem>>, vector<1x128xf32>
    %c7_22 = arith.constant 7 : index
    %c0_23 = arith.constant 0 : index
    %31 = vector.load %arg4[%c7_22, %c0_23] : memref<16x128xf32, #tpu.memory_space<vmem>>, vector<1x128xf32>
    tpu.vector_store %arg4[%c7_22, %c0_23], %30 {strides = array<i32>} : memref<16x128xf32, #tpu.memory_space<vmem>>, vector<1x128xf32>,
    %c8 = arith.constant 8 : index
    %32 = memref.load %arg1[%c8] : memref<16xi32, #tpu.memory_space<smem>>
    %33 = arith.index_cast %32 : i32 to index
    %c0_24 = arith.constant 0 : index
    %34 = vector.load %arg3[%33, %c0_24] : memref<128x128xf32, #tpu.memory_space<vmem>>, vector<1x128xf32>
    %c8_25 = arith.constant 8 : index
    %c0_26 = arith.constant 0 : index
    %35 = vector.load %arg4[%c8_25, %c0_26] : memref<16x128xf32, #tpu.memory_space<vmem>>, vector<1x128xf32>
    tpu.vector_store %arg4[%c8_25, %c0_26], %34 {strides = array<i32>} : memref<16x128xf32, #tpu.memory_space<vmem>>, vector<1x128xf32>,
    %c9 = arith.constant 9 : index
    %36 = memref.load %arg1[%c9] : memref<16xi32, #tpu.memory_space<smem>>
    %37 = arith.index_cast %36 : i32 to index
    %c0_27 = arith.constant 0 : index
    %38 = vector.load %arg3[%37, %c0_27] : memref<128x128xf32, #tpu.memory_space<vmem>>, vector<1x128xf32>
    %c9_28 = arith.constant 9 : index
    %c0_29 = arith.constant 0 : index
    %39 = vector.load %arg4[%c9_28, %c0_29] : memref<16x128xf32, #tpu.memory_space<vmem>>, vector<1x128xf32>
    tpu.vector_store %arg4[%c9_28, %c0_29], %38 {strides = array<i32>} : memref<16x128xf32, #tpu.memory_space<vmem>>, vector<1x128xf32>,
    %c10 = arith.constant 10 : index
    %40 = memref.load %arg1[%c10] : memref<16xi32, #tpu.memory_space<smem>>
    %41 = arith.index_cast %40 : i32 to index
    %c0_30 = arith.constant 0 : index
    %42 = vector.load %arg3[%41, %c0_30] : memref<128x128xf32, #tpu.memory_space<vmem>>, vector<1x128xf32>
    %c10_31 = arith.constant 10 : index
    %c0_32 = arith.constant 0 : index
    %43 = vector.load %arg4[%c10_31, %c0_32] : memref<16x128xf32, #tpu.memory_space<vmem>>, vector<1x128xf32>
    tpu.vector_store %arg4[%c10_31, %c0_32], %42 {strides = array<i32>} : memref<16x128xf32, #tpu.memory_space<vmem>>, vector<1x128xf32>,
    %c11 = arith.constant 11 : index
    %44 = memref.load %arg1[%c11] : memref<16xi32, #tpu.memory_space<smem>>
    %45 = arith.index_cast %44 : i32 to index
    %c0_33 = arith.constant 0 : index
    %46 = vector.load %arg3[%45, %c0_33] : memref<128x128xf32, #tpu.memory_space<vmem>>, vector<1x128xf32>
    %c11_34 = arith.constant 11 : index
    %c0_35 = arith.constant 0 : index
    %47 = vector.load %arg4[%c11_34, %c0_35] : memref<16x128xf32, #tpu.memory_space<vmem>>, vector<1x128xf32>
    tpu.vector_store %arg4[%c11_34, %c0_35], %46 {strides = array<i32>} : memref<16x128xf32, #tpu.memory_space<vmem>>, vector<1x128xf32>,
    %c12 = arith.constant 12 : index
    %48 = memref.load %arg1[%c12] : memref<16xi32, #tpu.memory_space<smem>>
    %49 = arith.index_cast %48 : i32 to index
    %c0_36 = arith.constant 0 : index
    %50 = vector.load %arg3[%49, %c0_36] : memref<128x128xf32, #tpu.memory_space<vmem>>, vector<1x128xf32>
    %c12_37 = arith.constant 12 : index
    %c0_38 = arith.constant 0 : index
    %51 = vector.load %arg4[%c12_37, %c0_38] : memref<16x128xf32, #tpu.memory_space<vmem>>, vector<1x128xf32>
    tpu.vector_store %arg4[%c12_37, %c0_38], %50 {strides = array<i32>} : memref<16x128xf32, #tpu.memory_space<vmem>>, vector<1x128xf32>,
    %c13 = arith.constant 13 : index
    %52 = memref.load %arg1[%c13] : memref<16xi32, #tpu.memory_space<smem>>
    %53 = arith.index_cast %52 : i32 to index
    %c0_39 = arith.constant 0 : index
    %54 = vector.load %arg3[%53, %c0_39] : memref<128x128xf32, #tpu.memory_space<vmem>>, vector<1x128xf32>
    %c13_40 = arith.constant 13 : index
    %c0_41 = arith.constant 0 : index
    %55 = vector.load %arg4[%c13_40, %c0_41] : memref<16x128xf32, #tpu.memory_space<vmem>>, vector<1x128xf32>
    tpu.vector_store %arg4[%c13_40, %c0_41], %54 {strides = array<i32>} : memref<16x128xf32, #tpu.memory_space<vmem>>, vector<1x128xf32>,
    %c14 = arith.constant 14 : index
    %56 = memref.load %arg1[%c14] : memref<16xi32, #tpu.memory_space<smem>>
    %57 = arith.index_cast %56 : i32 to index
    %c0_42 = arith.constant 0 : index
    %58 = vector.load %arg3[%57, %c0_42] : memref<128x128xf32, #tpu.memory_space<vmem>>, vector<1x128xf32>
    %c14_43 = arith.constant 14 : index
    %c0_44 = arith.constant 0 : index
    %59 = vector.load %arg4[%c14_43, %c0_44] : memref<16x128xf32, #tpu.memory_space<vmem>>, vector<1x128xf32>
    tpu.vector_store %arg4[%c14_43, %c0_44], %58 {strides = array<i32>} : memref<16x128xf32, #tpu.memory_space<vmem>>, vector<1x128xf32>,
    %c15 = arith.constant 15 : index
    %60 = memref.load %arg1[%c15] : memref<16xi32, #tpu.memory_space<smem>>
    %61 = arith.index_cast %60 : i32 to index
    %c0_45 = arith.constant 0 : index
    %62 = vector.load %arg3[%61, %c0_45] : memref<128x128xf32, #tpu.memory_space<vmem>>, vector<1x128xf32>
    %c15_46 = arith.constant 15 : index
    %c0_47 = arith.constant 0 : index
    %63 = vector.load %arg4[%c15_46, %c0_47] : memref<16x128xf32, #tpu.memory_space<vmem>>, vector<1x128xf32>
    tpu.vector_store %arg4[%c15_46, %c0_47], %62 {strides = array<i32>} : memref<16x128xf32, #tpu.memory_space<vmem>>, vector<1x128xf32>,
    %c0_48 = arith.constant 0 : index
    %c0_49 = arith.constant 0 : index
    %64 = vector.load %arg4[%c0_48, %c0_49] : memref<16x128xf32, #tpu.memory_space<vmem>>, vector<16x128xf32>
    %cst = arith.constant dense<0xFF800000> : vector<16xf32>
    %65 = vector.multi_reduction <maximumf>, %64, %cst [1] : vector<16x128xf32> to vector<16xf32>
    %66 = vector.shape_cast %65 : vector<16xf32> to vector<16x1xf32>
    %67 = vector.broadcast %66 : vector<16x1xf32> to vector<16x128xf32>
    %68 = arith.subf %64, %67 : vector<16x128xf32>
    %69 = math.exp %68 : vector<16x128xf32>
    %cst_50 = arith.constant dense<0.000000e+00> : vector<16xf32>
    %70 = vector.multi_reduction <add>, %69, %cst_50 [1] : vector<16x128xf32> to vector<16xf32>
    %71 = vector.shape_cast %70 : vector<16xf32> to vector<16x1xf32>
    %72 = math.log %71 : vector<16x1xf32>
    %73 = arith.addf %66, %72 : vector<16x1xf32>
    %74 = tpu.iota {dimensions = array<i32: 1>} : vector<16x128xi32>
    %c0_51 = arith.constant 0 : index
    %c0_52 = arith.constant 0 : index
    %75 = vector.load %arg2[%c0_51, %c0_52] : memref<16x1xi32, #tpu.memory_space<vmem>>, vector<16x1xi32>
    %76 = vector.broadcast %75 : vector<16x1xi32> to vector<16x128xi32>
    %77 = arith.cmpi eq, %74, %76 : vector<16x128xi32>
    %cst_53 = arith.constant 0.000000e+00 : f32
    %78 = vector.broadcast %cst_53 : f32 to vector<16x128xf32>
    %79 = arith.select %77, %64, %78 : vector<16x128xi1>, vector<16x128xf32>
    %cst_54 = arith.constant dense<0.000000e+00> : vector<16xf32>
    %80 = vector.multi_reduction <add>, %79, %cst_54 [1] : vector<16x128xf32> to vector<16xf32>
    %81 = vector.shape_cast %80 : vector<16xf32> to vector<16x1xf32>
    %82 = arith.subf %73, %81 : vector<16x1xf32>
    %cst_55 = arith.constant dense<0.000000e+00> : vector<1xf32>
    %83 = vector.multi_reduction <add>, %82, %cst_55 [0] : vector<16x1xf32> to vector<1xf32>
    %84 = vector.shape_cast %83 : vector<1xf32> to vector<1x1xf32>
    %cst_56 = arith.constant 6.250000e-02 : f32
    %85 = vector.broadcast %cst_56 : f32 to vector<1x1xf32>
    %86 = arith.mulf %84, %85 : vector<1x1xf32>
    %c0_57 = arith.constant 0 : index
    %c0_58 = arith.constant 0 : index
    %87 = vector.load %arg5[%c0_57, %c0_58] : memref<1x1xf32, #tpu.memory_space<vmem>>, vector<1x1xf32>
    tpu.vector_store %arg5[%c0_57, %c0_58], %86 {strides = array<i32>} : memref<1x1xf32, #tpu.memory_space<vmem>>, vector<1x1xf32>,
    return
  }
  func.func @transform_0(%arg0: i32, %arg1: memref<16xi32, #tpu.memory_space<smem>>) -> (i32, i32) {
    %c0_i32 = arith.constant 0 : i32
    %c0_i32_0 = arith.constant 0 : i32
    %c0_i32_1 = arith.constant 0 : i32
    return %c0_i32, %c0_i32_0 : i32, i32
  }
  func.func @transform_1(%arg0: i32, %arg1: memref<16xi32, #tpu.memory_space<smem>>) -> (i32, i32) {
    %c0_i32 = arith.constant 0 : i32
    %c0_i32_0 = arith.constant 0 : i32
    %c0_i32_1 = arith.constant 0 : i32
    return %c0_i32, %c0_i32_0 : i32, i32
  }
  func.func @transform_2(%arg0: i32, %arg1: memref<16xi32, #tpu.memory_space<smem>>) -> (i32, i32) {
    %c0_i32 = arith.constant 0 : i32
    %c0_i32_0 = arith.constant 0 : i32
    %c0_i32_1 = arith.constant 0 : i32
    return %c0_i32, %c0_i32_0 : i32, i32
  }
  func.func @transform_3(%arg0: i32, %arg1: memref<16xi32, #tpu.memory_space<smem>>) -> (i32, i32) {
    %c0_i32 = arith.constant 0 : i32
    %c0_i32_0 = arith.constant 0 : i32
    %c0_i32_1 = arith.constant 0 : i32
    return %c0_i32, %c0_i32_0 : i32, i32
  }
}

</mosaic_0001>

<bundles_post_ra>
// kernel: tpu_custom_call.1
= control target key start
LH: loop header
LB: loop body
LE: loop exit
PB: predicated region body
PF: predicated region fallthrough
CT: control target
= control target key end

     0   :  { %s415_s0 = inlined_call_operand.vmem [shape: s32[16], index: 0, kind: input, shape index: {}]   ;;  %s416_s1 = inlined_call_operand.vmem [shape: s32[16,1], index: 1, kind: input, shape index: {}]   ;;  %s417_s2 = inlined_call_operand.hbm [shape: f32[128,128], index: 2, kind: input, shape index: {}]   ;;  %s418_s3 = inlined_call_operand.hbm [shape: f32[16,128], index: 3, kind: output, shape index: {0}]   ;;  %s419_s4 = inlined_call_operand.hbm [shape: f32[1,1], index: 4, kind: output, shape index: {1}]  }
   0x1   :  { %s10_s17 = sshll.u32 %s415_s0, 4  ;;  %s11_s17 = int_to_ptr.vmem [resolvable:$true] %s10_s17 }
   0x2   :  { %s231_s18 = scalar_lea.vmem %s11_s17, 16  ;;  %p236_p1 = scmp.lt.s32.totalorder %s11_s17, %s11_s17 }
   0x3   :  { %p232_p0 = scmp.ne.s32.totalorder %s11_s17, %s231_s18  ;;  %p237_p2 = scmp.lt.s32.totalorder %s231_s18, %s231_s18 }
   0x5   :  { %p238_p3 = por %p237_p2, %p236_p1 }
   0x7   :  { %p239_p4 = pnand %p238_p3, %p232_p0 }
   0x9   :  { %242 = shalt.err (!%p239_p4)  }
   0xa   :  { %s317_s19 = smov [#allocation3]  }
   0xb   :  { %13 = dma.vmem_to_smem %s11_s17, 16, %s317_s19, [#allocation2] }
   0xc   :  { %309 = dma.done.wait [#allocation2], 16 }
   0xd   :  { %310 = vsyncadd [#allocation2], 4294967280 }
   0xe   :  { %15 = sfence }
   0xf   :  { %16 = vsyncpa [#allocation5], 0 }
  0x10   :  { %17 = vsyncpa [#allocation6], 0 }
  0x11   :  { %18 = vsyncpa [#allocation9], 0  ;;  %s318_s20 = smov [#allocation4]   ;;  %s243_s23 = scalar_lea.hbm %s417_s2, 2048 }
  0x12   :  { %s26_s21 = sshll.u32 %s318_s20, 4  ;;  %p244_p5 = scmp.ne.s32.totalorder %s417_s2, %s243_s23  ;;  %s27_s21 = int_to_ptr.vmem [resolvable:$true] %s26_s21 }
  0x13   :  { %p247_p6 = scmp.lt.u32.totalorder %s243_s23, %s417_s2 }
  0x15   :  { %p249_p7 = pnand %p247_p6, %p244_p5 }
  0x17   :  { %252 = shalt.err (!%p249_p7)
}
  0x18   :  { %s253_s28 = scalar_lea.vmem %s27_s21, 2048  ;;  %p258_p9 = scmp.lt.s32.totalorder %s27_s21, %s27_s21 }
  0x19   :  { %p254_p8 = scmp.ne.s32.totalorder %s27_s21, %s253_s28  ;;  %p259_p10 = scmp.lt.s32.totalorder %s253_s28, %s253_s28 }
  0x1b   :  { %p260_p11 = por %p259_p10, %p258_p9 }
  0x1d   :  { %p261_p12 = pnand %p260_p11, %p254_p8 }
  0x1f   :  { %264 = shalt.err (!%p261_p12)
}
  0x20   :  { %s319_s29 = smov 128   ;;  %s320_s30 = smov 8  }
  0x21   :  { %32 = dma.hbm_to_vmem [thread:$0]  %s417_s2, 2048, %s27_s21, [#allocation5], %s319_s29, %s319_s29, %s320_s30  }
  0x22   :  { %311 = dma.done.wait [#allocation5], 2048  }
  0x23   :  { %312 = vsyncadd [#allocation5], 4294965248  ;;  %s36_s7 = sld [smem:[#allocation3]]  ;;  %s199_s8 = sld [smem:[#allocation3 + $0x1]]  ;;  %v321_v0 = vmov 0   ;;  %v124_v1 = vld [vmem:[%s416_s1] sm:$0xff]  ;;  %v122_v24 = vlaneseq }
  0x24   :  { %221 = vset.pattern.permute.xlu1 %v321_v0  ;;  %222 = vset.pattern.permute.xlu0 %v321_v0  ;;  %s200_s9 = sld [smem:[#allocation3 + $0x2]]  ;;  %s201_s10 = sld [smem:[#allocation3 + $0x3]]  ;;  %v125_v2 = vld [vmem:[%s416_s1 + $0x8] sm:$0xff] }
  0x25   :  { %s202_s11 = sld [smem:[#allocation3 + $0x4]]  ;;  %s203_s12 = sld [smem:[#allocation3 + $0x5]]  ;;  %127 = vperm.xlu1 %221, %v124_v1   ;;  %v123_v26 = vand.u32 127, %v122_v24 }
  0x26   :  { %s204_s13 = sld [smem:[#allocation3 + $0x6]]  ;;  %s367_s14 = sld [smem:[#allocation3 + $0x7]] }
  0x27   :  { %s369_s15 = sld [smem:[#allocation3 + $0x8]]  ;;  %s371_s16 = sld [smem:[#allocation3 + $0x9]] }
  0x28   :  { %s373_s17 = sld [smem:[#allocation3 + $0xa]]  ;;  %s375_s2 = sld [smem:[#allocation3 + $0xb]] }
  0x29   :  { %s37_s0 = scalar_lea.vmem [#allocation4], %s36_s7  ;;  %s41_s22 = scalar_lea.vmem [#allocation4], %s199_s8  ;;  %130 = vperm.xlu1 %221, %v125_v2  }
  0x2a   :  { %v38_v3 = vld [vmem:[%s37_s0] sm:$0x1]  ;;  %s45_s23 = scalar_lea.vmem [#allocation4], %s200_s9  ;;  %s49_s24 = scalar_lea.vmem [#allocation4], %s201_s10 }
  0x2b   :  { %v42_v4 = vld [vmem:[%s41_s22] sm:$0x1]  ;;  %39 = vst [vmem:[#allocation7] sm:$0x1] %v38_v3  ;;  %s53_s25 = scalar_lea.vmem [#allocation4], %s202_s11  ;;  %s57_s26 = scalar_lea.vmem [#allocation4], %s203_s12 }
  0x2c   :  { %43 = vst [vmem:[#allocation7 + $0x1] sm:$0x1] %v42_v4  ;;  %v46_v5 = vld [vmem:[%s45_s23] sm:$0x1]  ;;  %s61_s1 = scalar_lea.vmem [#allocation4], %s204_s13  ;;  %s65_s27 = scalar_lea.vmem [#allocation4], %s367_s14 }
  0x2d   :  { %v50_v6 = vld [vmem:[%s49_s24] sm:$0x1]  ;;  %47 = vst [vmem:[#allocation7 + $0x2] sm:$0x1] %v46_v5  ;;  %s69_s28 = scalar_lea.vmem [#allocation4], %s369_s15  ;;  %s73_s5 = scalar_lea.vmem [#allocation4], %s371_s16 }
  0x2e   :  { %51 = vst [vmem:[#allocation7 + $0x3] sm:$0x1] %v50_v6  ;;  %v54_v7 = vld [vmem:[%s53_s25] sm:$0x1]  ;;  %s77_s6 = scalar_lea.vmem [#allocation4], %s373_s17  ;;  %s81_s7 = scalar_lea.vmem [#allocation4], %s375_s2 }
  0x2f   :  { %v58_v8 = vld [vmem:[%s57_s26] sm:$0x1]  ;;  %55 = vst [vmem:[#allocation7 + $0x4] sm:$0x1] %v54_v7  ;;  %s210_s8 = sld [smem:[#allocation3 + $0xc]]  ;;  %s211_s9 = sld [smem:[#allocation3 + $0xd]] }
  0x30   :  { %59 = vst [vmem:[#allocation7 + $0x5] sm:$0x1] %v58_v8  ;;  %v62_v9 = vld [vmem:[%s61_s1] sm:$0x1]  ;;  %s212_s10 = sld [smem:[#allocation3 + $0xe]]  ;;  %s213_s11 = sld [smem:[#allocation3 + $0xf]] }
  0x31   :  { %v66_v10 = vld [vmem:[%s65_s27] sm:$0x1]  ;;  %63 = vst [vmem:[#allocation7 + $0x6] sm:$0x1] %v62_v9  ;;  %s322_s16 = smov [#allocation7]  }
  0x32   :  { %67 = vst [vmem:[#allocation7 + $0x7] sm:$0x1] %v66_v10  ;;  %v70_v11 = vld [vmem:[%s69_s28] sm:$0x1]  ;;  %s157_s17 = sshll.u32 %s322_s16, 4  ;;  %s158_s17 = int_to_ptr.vmem [resolvable:$true] %s157_s17 }
  0x33   :  { %v74_v12 = vld [vmem:[%s73_s5] sm:$0x1]  ;;  %71 = vst [vmem:[#allocation7 + $0x8] sm:$0x1] %v70_v11  ;;  %s265_s2 = scalar_lea.vmem %s158_s17, 256  ;;  %p270_p0 = scmp.lt.s32.totalorder %s158_s17, %s158_s17 }
  0x34   :  { %75 = vst [vmem:[#allocation7 + $0x9] sm:$0x1] %v74_v12  ;;  %v78_v13 = vld [vmem:[%s77_s6] sm:$0x1]  ;;  %p266_p13 = scmp.ne.s32.totalorder %s158_s17, %s265_s2  ;;  %p271_p1 = scmp.lt.s32.totalorder %s265_s2, %s265_s2 }
  0x35   :  { %v82_v14 = vld [vmem:[%s81_s7] sm:$0x1]  ;;  %79 = vst [vmem:[#allocation7 + $0xa] sm:$0x1] %v78_v13  ;;  %s85_s12 = scalar_lea.vmem [#allocation4], %s210_s8  ;;  %s89_s13 = scalar_lea.vmem [#allocation4], %s211_s9 }
  0x36   :  { %83 = vst [vmem:[#allocation7 + $0xb] sm:$0x1] %v82_v14  ;;  %v86_v16 = vld [vmem:[%s85_s12] sm:$0x1]  ;;  %s93_s14 = scalar_lea.vmem [#allocation4], %s212_s10  ;;  %s97_s15 = scalar_lea.vmem [#allocation4], %s213_s11 }
  0x37   :  { %87 = vst [vmem:[#allocation7 + $0xc] sm:$0x1] %v86_v16  ;;  %v90_v17 = vld [vmem:[%s89_s13] sm:$0x1]  ;;  %p272_p2 = por %p271_p1, %p270_p0 }
  0x38   :  { %v94_v18 = vld [vmem:[%s93_s14] sm:$0x1]  ;;  %91 = vst [vmem:[#allocation7 + $0xd] sm:$0x1] %v90_v17 }
  0x39   :  { %v100_v15 = vld [vmem:[#allocation7] sm:$0xff]  ;;  %95 = vst [vmem:[#allocation7 + $0xe] sm:$0x1] %v94_v18  ;;  %p273_p3 = pnand %p272_p2, %p266_p13 }
  0x3a   :  { %102 = vmax.xlane.f32.xlu0 %v100_v15  ;;  %v98_v19 = vld [vmem:[%s97_s15] sm:$0x1] }
  0x3b   :  { %99 = vst [vmem:[#allocation7 + $0xf] sm:$0x1] %v98_v19 }
  0x42   :  { %v101_v20 = vld [vmem:[#allocation7 + $0x8] sm:$0xff] }
  0x43   :  { %104 = vmax.xlane.f32.xlu0 %v101_v20 }
  0xa4   :  { %v128_v25 = vpop.permute.xlu1 %127 }
  0xa5   :  { %vm132_vm0 = vcmp.eq.s32.totalorder %v123_v26, %v128_v25 }
  0xa6   :  { %v134_v32 = vsel %vm132_vm0, %v100_v15, 0.0 }
  0xa8   :  { %v131_v31 = vpop.permute.xlu1 %130 }
  0xa9   :  { %vm133_vm1 = vcmp.eq.s32.totalorder %v123_v26, %v131_v31 }
  0xaa   :  { %v135_v33 = vsel %vm133_vm1, %v101_v20, 0.0 }
  0xc7   :  { %v103_v21 = vpop.xlane.xlu0 %102 }
  0xc8   :  { %v106_v22 = vsub.f32 %v100_v15, %v103_v21 }
  0xca   :  { %v108_v23 = vmul.f32 1.442695, %v106_v22 }
  0xcc   :  { %223 = vpow2.f32 %v108_v23 }
  0xd0   :  { %v105_v27 = vpop.xlane.xlu0 %104 }
  0xd1   :  { %v107_v28 = vsub.f32 %v101_v20, %v105_v27 }
  0xd3   :  { %v110_v29 = vmul.f32 1.442695, %v107_v28 }
  0xd5   :  { %225 = vpow2.f32 %v110_v29 }
  0xd6   :  { %v224_v30 = vpop.eup %223 }
  0xd7   :  { %112 = vadd.xlane.f32.xlu0 %v224_v30 }
  0xdb   :  { %136 = vadd.xlane.f32.xlu0 %v134_v32 }
  0xdf   :  { %138 = vadd.xlane.f32.xlu0 %v135_v33  ;;  %v226_v34 = vpop.eup %225 }
  0xe0   :  { %114 = vadd.xlane.f32.xlu1 %v226_v34 }
  0xe1   :  { %276 = shalt.err (!%p273_p3)
}
  0xe2   :  { %s277_s20 = scalar_lea.hbm %s418_s3, 256 }
  0xe3   :  { %p278_p4 = scmp.ne.s32.totalorder %s418_s3, %s277_s20  ;;  %p281_p5 = scmp.lt.u32.totalorder %s277_s20, %s418_s3 }
  0xe5   :  { %p283_p6 = pnand %p281_p5, %p278_p4 }
  0xe7   :  { %286 = shalt.err (!%p283_p6)
}
  0xe8   :  { %163 = dma.vmem_to_hbm [thread:$0]  %s158_s17, 256, %s418_s3, [#allocation6], %s319_s29, %s319_s29, %s320_s30   ;;  %vm150_vm2 = vcmask 0  }
  0xe9   :  { %s323_s3 = smov [#allocation8]  }
  0xea   :  { %s170_s29 = sshll.u32 %s323_s3, 4  ;;  %s171_s29 = int_to_ptr.vmem [resolvable:$true] %s170_s29 }
  0xeb   :  { %s287_s30 = scalar_lea.vmem %s171_s29, 16  ;;  %s291_s26 = scalar_lea.vmem %s171_s29, 32 }
  0xec   :  { %p288_p7 = scmp.ne.s32.totalorder %s171_s29, %s287_s30  ;;  %p292_p8 = scmp.lt.s32.totalorder %s171_s29, %s171_s29 }
  0xed   :  { %p293_p9 = scmp.lt.s32.totalorder %s291_s26, %s287_s30 }
  0xef   :  { %p294_p10 = por %p293_p9, %p292_p8 }
  0xf1   :  { %p295_p11 = pnand %p294_p10, %p288_p7 }
 0x164   :  { %v113_v35 = vpop.xlane.xlu0 %112 }
 0x165   :  { %227 = vlog2.f32 %v113_v35 }
 0x168   :  { %v137_v39 = vpop.xlane.xlu0 %136 }
 0x16c   :  { %v139_v44 = vpop.xlane.xlu0 %138 }
 0x16d   :  { %v115_v36 = vpop.xlane.xlu1 %114 }
 0x16e   :  { %229 = vlog2.f32 %v115_v36 }
 0x16f   :  { %v228_v37 = vpop.eup %227 }
 0x170   :  { %v117_v38 = vmul.f32 0.6931472, %v228_v37 }
 0x172   :  { %v120_v42 = vadd.f32 %v117_v38, %v103_v21 }
 0x174   :  { %v140_v45 = vsub.f32 %v120_v42, %v137_v39 }
 0x178   :  { %v230_v40 = vpop.eup %229 }
 0x179   :  { %v119_v41 = vmul.f32 0.6931472, %v230_v40 }
 0x17b   :  { %v121_v43 = vadd.f32 %v119_v41, %v105_v27 }
 0x17d   :  { %v141_v46 = vsub.f32 %v121_v43, %v139_v44 }
 0x17f   :  { %v142_v47 = vadd.f32 %v141_v46, %v140_v45 }
 0x181   :  { %v143_v48 = vrot.slane %v142_v47, 4 }
 0x183   :  { %v144_v49 = vadd.f32 %v143_v48, %v142_v47 }
 0x185   :  { %v145_v50 = vrot.slane %v144_v49, 2 }
 0x187   :  { %v146_v51 = vadd.f32 %v145_v50, %v144_v49 }
 0x189   :  { %v147_v52 = vrot.slane %v146_v51, 1 }
 0x18b   :  { %v148_v53 = vadd.f32 %v147_v52, %v146_v51 }
 0x18d   :  { %v149_v54 = vmul.f32 0.0625, %v148_v53 }
 0x18f   :  { %151 = vst.msk [vmem:[#allocation8] sm:$0x1] %vm150_vm2, %v149_v54 }
 0x190   :  { %298 = shalt.err (!%p295_p11)
}
 0x191   :  { %s299_s28 = scalar_lea.hbm %s419_s4, 16 }
 0x192   :  { %p300_p12 = scmp.ne.s32.totalorder %s419_s4, %s299_s28  ;;  %p303_p13 = scmp.lt.u32.totalorder %s299_s28, %s419_s4 }
 0x194   :  { %p305_p0 = pnand %p303_p13, %p300_p12 }
 0x196   :  { %308 = shalt.err (!%p305_p0)
}
 0x197   :  { %173 = dma.vmem_to_hbm [thread:$0]  %s171_s29, 16, %s419_s4, [#allocation9]  }
 0x198   :  { %313 = dma.done.wait [#allocation6], 256  }
 0x199   :  { %314 = vsyncadd [#allocation6], 4294967040 }
 0x19a   :  { %315 = dma.done.wait [#allocation9], 16  }
 0x19b   :  { %316 = vsyncadd [#allocation9], 4294967280 }
 0x19c   :  { %180 = vsyncpa [#allocation5], 1 }
 0x19d   :  { %181 = vsyncpa [#allocation6], 1 }
 0x19e   :  { %182 = vsyncpa [#allocation9], 1 }

</bundles_post_ra>
